<compile_context>
chip_gen: v7x
topology: tpu7x:2x2x1
jax: 0.10.0
libtpu: 0.0.40
codegen_flags: <defaults>
</compile_context>

<pallas_src>
import jax
import jax.numpy as jnp
from jax.experimental import pallas as pl
from jax.experimental.pallas import tpu as pltpu

STATE_DIM = 4      # CartPole-v0 observation_space.shape[0]
HIDDEN_DIM = 128
BLOCK_B = 128      # batch rows per grid step (sublane-dense tiles)


def value_net_kernel(x_ref, w1_ref, b1_ref, w2_ref, b2_ref, out_ref):
    """One 128-row batch block: out = relu(x @ W1 + b1) . w2_row + b2."""
    x = x_ref[...]                                   # (BLOCK_B, STATE_DIM) f32
    w1 = w1_ref[...]                                 # (STATE_DIM, HIDDEN_DIM) f32

    # fc1 on the VPU: K = STATE_DIM = 4 -> 4 broadcast FMAs (outer products),
    # cheaper than pushing a 97%-zero-padded tile through the MXU.
    h = x[:, 0:1] * w1[0:1, :]                       # (BLOCK_B, HIDDEN_DIM)
    for k in range(1, STATE_DIM):                    # static unroll (traced once)
        h = h + x[:, k:k + 1] * w1[k:k + 1, :]
    h = jnp.maximum(h + b1_ref[...], 0.0)            # bias + ReLU in f32

    # fc2 as VPU multiply + XLU lane reduce; w2 stored pre-transposed as (1, H).
    # b2 is a scalar read from SMEM (rides the scalar slot).
    v = jnp.sum(h * w2_ref[...], axis=-1, keepdims=True) + b2_ref[0, 0]

    out_ref[...] = v.astype(out_ref.dtype)           # (BLOCK_B, 1) whole-tile store


def value_net_forward(x, w1, b1, w2_row, b2):
    """x: (B, STATE_DIM) f32 -> (B, 1) f32. Batch is gridded in 128-row blocks."""
    B = x.shape[0]
    Bp = ((B + BLOCK_B - 1) // BLOCK_B) * BLOCK_B
    if Bp != B:
        x = jnp.pad(x, ((0, Bp - B), (0, 0)))
    nb = Bp // BLOCK_B

    out = pl.pallas_call(
        value_net_kernel,
        out_shape=jax.ShapeDtypeStruct((Bp, 1), jnp.float32),
        grid=(nb,),
        in_specs=[
            # x: one 128-row block per grid step.
            pl.BlockSpec((BLOCK_B, STATE_DIM), lambda i: (i, 0)),
            # Weights / biases: same (tiny) block every step, stay resident in VMEM.
            pl.BlockSpec((STATE_DIM, HIDDEN_DIM), lambda i: (0, 0)),
            pl.BlockSpec((1, HIDDEN_DIM), lambda i: (0, 0)),
            pl.BlockSpec((1, HIDDEN_DIM), lambda i: (0, 0)),
            # b2: single scalar in SMEM (no padded VMEM tile for 4 bytes).
            pl.BlockSpec(memory_space=pltpu.MemorySpace.SMEM),
        ],
        out_specs=pl.BlockSpec((BLOCK_B, 1), lambda i: (i, 0)),
        compiler_params=pltpu.CompilerParams(
            # Batch blocks are independent -> shard across v7x's 2 TensorCores.
            dimension_semantics=("parallel",),
        ),
    )(x, w1, b1, w2_row, b2)

    return out[:B]


def init_params(key, state_dim, hidden_dim):
    """Mirror PyTorch Linear default init: U(-1/sqrt(fan_in), +1/sqrt(fan_in)).

    Note: fc2 weight is stored pre-transposed as a (1, hidden_dim) row so the
    kernel can do a VPU multiply + lane reduce instead of a (H, 1) MXU matmul.
    """
    k1, k2, k3, k4 = jax.random.split(key, 4)
    bound1 = 1.0 / jnp.sqrt(state_dim)
    bound2 = 1.0 / jnp.sqrt(hidden_dim)
    w1 = jax.random.uniform(k1, (state_dim, hidden_dim), jnp.float32, -bound1, bound1)
    b1 = jax.random.uniform(k2, (1, hidden_dim), jnp.float32, -bound1, bound1)
    w2_row = jax.random.uniform(k3, (1, hidden_dim), jnp.float32, -bound2, bound2)
    b2 = jax.random.uniform(k4, (1, 1), jnp.float32, -bound2, bound2)
    return w1, b1, w2_row, b2


if __name__ == "__main__":
    key = jax.random.PRNGKey(0)
    k_x, k_p = jax.random.split(key)

    BATCH = 256  # e.g. a rollout / replay batch; exercises the 2-block parallel grid
    x = jax.random.normal(k_x, (BATCH, STATE_DIM), dtype=jnp.float32)
    w1, b1, w2_row, b2 = init_params(k_p, STATE_DIM, HIDDEN_DIM)

    out = value_net_forward(x, w1, b1, w2_row, b2)
    jax.block_until_ready(out)

    # Reference in plain JAX (same math as the PyTorch forward).
    ref = jnp.maximum(x @ w1 + b1, 0.0) @ w2_row.T + b2
    assert out.shape == (BATCH, 1)
    assert jnp.allclose(out, ref, atol=1e-4, rtol=1e-4)

    print("KERNEL_OK")
</pallas_src>

<mosaic_0001>
module attributes {stable_mosaic.version = 11 : i64} {
  func.func @value_net_kernel(%arg0: i32, %arg1: memref<128x4xf32, #tpu.memory_space<vmem>>, %arg2: memref<4x128xf32, #tpu.memory_space<vmem>>, %arg3: memref<1x128xf32, #tpu.memory_space<vmem>>, %arg4: memref<1x128xf32, #tpu.memory_space<vmem>>, %arg5: memref<1x1xf32, #tpu.memory_space<smem>>, %arg6: memref<128x1xf32, #tpu.memory_space<vmem>>) attributes {dimension_semantics = [#tpu.dimension_semantics<parallel>], iteration_bounds = array<i64: 2>, scalar_prefetch = 0 : i64, scratch_operands = 0 : i64, tpu.core_type = #tpu.core_type<tc>, window_params = [{transform_indices = @transform_0, window_bounds = array<i64: 128, 4>}, {pipeline_mode = #tpu.pipeline_mode<synchronous>, transform_indices = @transform_1, window_bounds = array<i64: 4, 128>}, {pipeline_mode = #tpu.pipeline_mode<synchronous>, transform_indices = @transform_2, window_bounds = array<i64: 1, 128>}, {pipeline_mode = #tpu.pipeline_mode<synchronous>, transform_indices = @transform_3, window_bounds = array<i64: 1, 128>}, {transform_indices = @transform_4, window_bounds = array<i64: 1, 1>}, {transform_indices = @transform_5, window_bounds = array<i64: 128, 1>}]} {
    %c0 = arith.constant 0 : index
    %c0_0 = arith.constant 0 : index
    %0 = vector.load %arg1[%c0, %c0_0] : memref<128x4xf32, #tpu.memory_space<vmem>>, vector<128x4xf32>
    %c0_1 = arith.constant 0 : index
    %c0_2 = arith.constant 0 : index
    %1 = vector.load %arg2[%c0_1, %c0_2] : memref<4x128xf32, #tpu.memory_space<vmem>>, vector<4x128xf32>
    %2 = vector.extract_strided_slice %0 {offsets = [0, 0], sizes = [128, 1], strides = [1, 1]} : vector<128x4xf32> to vector<128x1xf32>
    %3 = vector.extract_strided_slice %1 {offsets = [0, 0], sizes = [1, 128], strides = [1, 1]} : vector<4x128xf32> to vector<1x128xf32>
    %4 = vector.broadcast %2 : vector<128x1xf32> to vector<128x128xf32>
    %5 = vector.broadcast %3 : vector<1x128xf32> to vector<128x128xf32>
    %6 = arith.mulf %4, %5 : vector<128x128xf32>
    %7 = vector.extract_strided_slice %0 {offsets = [0, 1], sizes = [128, 1], strides = [1, 1]} : vector<128x4xf32> to vector<128x1xf32>
    %8 = vector.extract_strided_slice %1 {offsets = [1, 0], sizes = [1, 128], strides = [1, 1]} : vector<4x128xf32> to vector<1x128xf32>
    %9 = vector.broadcast %7 : vector<128x1xf32> to vector<128x128xf32>
    %10 = vector.broadcast %8 : vector<1x128xf32> to vector<128x128xf32>
    %11 = arith.mulf %9, %10 : vector<128x128xf32>
    %12 = arith.addf %6, %11 : vector<128x128xf32>
    %13 = vector.extract_strided_slice %0 {offsets = [0, 2], sizes = [128, 1], strides = [1, 1]} : vector<128x4xf32> to vector<128x1xf32>
    %14 = vector.extract_strided_slice %1 {offsets = [2, 0], sizes = [1, 128], strides = [1, 1]} : vector<4x128xf32> to vector<1x128xf32>
    %15 = vector.broadcast %13 : vector<128x1xf32> to vector<128x128xf32>
    %16 = vector.broadcast %14 : vector<1x128xf32> to vector<128x128xf32>
    %17 = arith.mulf %15, %16 : vector<128x128xf32>
    %18 = arith.addf %12, %17 : vector<128x128xf32>
    %19 = vector.extract_strided_slice %0 {offsets = [0, 3], sizes = [128, 1], strides = [1, 1]} : vector<128x4xf32> to vector<128x1xf32>
    %20 = vector.extract_strided_slice %1 {offsets = [3, 0], sizes = [1, 128], strides = [1, 1]} : vector<4x128xf32> to vector<1x128xf32>
    %21 = vector.broadcast %19 : vector<128x1xf32> to vector<128x128xf32>
    %22 = vector.broadcast %20 : vector<1x128xf32> to vector<128x128xf32>
    %23 = arith.mulf %21, %22 : vector<128x128xf32>
    %24 = arith.addf %18, %23 : vector<128x128xf32>
    %c0_3 = arith.constant 0 : index
    %c0_4 = arith.constant 0 : index
    %25 = vector.load %arg3[%c0_3, %c0_4] : memref<1x128xf32, #tpu.memory_space<vmem>>, vector<1x128xf32>
    %26 = vector.broadcast %25 : vector<1x128xf32> to vector<128x128xf32>
    %27 = arith.addf %24, %26 : vector<128x128xf32>
    %cst = arith.constant 0.000000e+00 : f32
    %28 = vector.broadcast %cst : f32 to vector<128x128xf32>
    %29 = arith.maximumf %27, %28 : vector<128x128xf32>
    %c0_5 = arith.constant 0 : index
    %c0_6 = arith.constant 0 : index
    %30 = vector.load %arg4[%c0_5, %c0_6] : memref<1x128xf32, #tpu.memory_space<vmem>>, vector<1x128xf32>
    %31 = vector.broadcast %30 : vector<1x128xf32> to vector<128x128xf32>
    %32 = arith.mulf %29, %31 : vector<128x128xf32>
    %cst_7 = arith.constant dense<0.000000e+00> : vector<128xf32>
    %33 = vector.multi_reduction <add>, %32, %cst_7 [1] : vector<128x128xf32> to vector<128xf32>
    %34 = vector.shape_cast %33 : vector<128xf32> to vector<128x1xf32>
    %c0_8 = arith.constant 0 : index
    %c0_9 = arith.constant 0 : index
    %35 = memref.load %arg5[%c0_8, %c0_9] : memref<1x1xf32, #tpu.memory_space<smem>>
    %36 = vector.broadcast %35 : f32 to vector<128x1xf32>
    %37 = arith.addf %34, %36 : vector<128x1xf32>
    %c0_10 = arith.constant 0 : index
    %c0_11 = arith.constant 0 : index
    %38 = vector.load %arg6[%c0_10, %c0_11] : memref<128x1xf32, #tpu.memory_space<vmem>>, vector<128x1xf32>
    tpu.vector_store %arg6[%c0_10, %c0_11], %37 {strides = array<i32>} : memref<128x1xf32, #tpu.memory_space<vmem>>, vector<128x1xf32>,
    return
  }
  func.func @transform_0(%arg0: i32) -> (i32, i32) {
    %c0_i32 = arith.constant 0 : i32
    %c0_i32_0 = arith.constant 0 : i32
    return %arg0, %c0_i32 : i32, i32
  }
  func.func @transform_1(%arg0: i32) -> (i32, i32) {
    %c0_i32 = arith.constant 0 : i32
    %c0_i32_0 = arith.constant 0 : i32
    %c0_i32_1 = arith.constant 0 : i32
    return %c0_i32, %c0_i32_0 : i32, i32
  }
  func.func @transform_2(%arg0: i32) -> (i32, i32) {
    %c0_i32 = arith.constant 0 : i32
    %c0_i32_0 = arith.constant 0 : i32
    %c0_i32_1 = arith.constant 0 : i32
    return %c0_i32, %c0_i32_0 : i32, i32
  }
  func.func @transform_3(%arg0: i32) -> (i32, i32) {
    %c0_i32 = arith.constant 0 : i32
    %c0_i32_0 = arith.constant 0 : i32
    %c0_i32_1 = arith.constant 0 : i32
    return %c0_i32, %c0_i32_0 : i32, i32
  }
  func.func @transform_4(%arg0: i32) -> (i32, i32) {
    %c0_i32 = arith.constant 0 : i32
    %c0_i32_0 = arith.constant 0 : i32
    %c0_i32_1 = arith.constant 0 : i32
    return %c0_i32, %c0_i32_0 : i32, i32
  }
  func.func @transform_5(%arg0: i32) -> (i32, i32) {
    %c0_i32 = arith.constant 0 : i32
    %c0_i32_0 = arith.constant 0 : i32
    return %arg0, %c0_i32 : i32, i32
  }
}

</mosaic_0001>

<bundles_post_ra>
// kernel: tpu_custom_call.1
= control target key start
LH: loop header
LB: loop body
LE: loop exit
PB: predicated region body
PF: predicated region fallthrough
CT: control target
= control target key end

     0   :  { %s909_s20 = smov 0   ;;  %s1249_s0 = inlined_call_operand.vmem [shape: f32[256,4], index: 0, kind: input, shape index: {}]   ;;  %s1250_s1 = inlined_call_operand.vmem [shape: f32[4,128], index: 1, kind: input, shape index: {}]   ;;  %s1251_s2 = inlined_call_operand.vmem [shape: f32[1,128], index: 2, kind: input, shape index: {}]   ;;  %s1252_s3 = inlined_call_operand.vmem [shape: f32[1,128], index: 3, kind: input, shape index: {}]   ;;  %s1253_s4 = inlined_call_operand.<no memory space> [shape: f32[1,1], index: 4, kind: input, shape index: {}]   ;;  %s1254_s5 = inlined_call_operand.vmem [shape: f32[256,1], index: 5, kind: output, shape index: {}]  }
   0x1   :  { %10 = sst [smem:[#allocation2]] %s1253_s4 }
   0x2 LB: > { %s831_s21 = sadd.s32 4294967295, %s870_s20   ;;  %p835_p0 = scmp.ge.s32.totalorder %s870_s20, 1  ;;  %s870_s20 = sphi %s909_s20, %s16_s20  }
   0x3   : > { %p189_p1 = scmp.lt.s32.totalorder %s870_s20, 3 }
   0x5   : > { %p190_p2 = pnand %p835_p0, %p189_p1 }
   0x6   : > { %s836_s22 = sshll.u32 (!%p190_p2), %s831_s21, 4  ;;  %v872_v0 = vmov (!%p190_p2), 0   ;;  %v873_v17 = vmov (!%p190_p2), 1   ;;  %v874_v18 = vmov (!%p190_p2), 2   ;;  %v875_v19 = vmov (!%p190_p2), 3   ;;  %s740_s7 = sld [smem:[#allocation2]] (!%p190_p2) }
   0x7   : > { %193 = sbr.rel (%p190_p2) target bundleno = 432 (0x1b0), region = 40  ;;  %857 = vset.pattern.permute.xlu1 (!%p190_p2), %v872_v0  ;;  %856 = vset.pattern.permute.xlu0 (!%p190_p2), %v872_v0  ;;  %p218_p3 = scmp.lt.s32.totalorder (!%p190_p2), %s836_s22, 31  ;;  %v326_v30 = vlaneseq (!%p190_p2)  ;;  %v1014_v40 = vld [vmem:[%s1250_s1] sm:$0xf] (!%p190_p2)  ;;  %vm758_vm0 = vcmask (!%p190_p2), 7168  }
   0x9   : > { %v1003_v33 = vshrl.u32 (!%p190_p2), %v326_v30, 7 }
   0xb   : > { %v412_v36 = vsub.s32 (!%p190_p2), 1, %v1003_v33  ;;  %v328_v37 = vsub.s32 (!%p190_p2), 0, %v1003_v33 }
   0xd   : > { %v1017_v41 = vrot.slane (!%p190_p2), %v1014_v40, %v412_v36  ;;  %v1020_v42 = vrot.slane (!%p190_p2), %v1014_v40, %v328_v37  ;;  %v512_v37 = vsub.s32 (!%p190_p2), 2, %v1003_v33 }
   0xe   : > { %s1256_s22 = smov (!%p218_p3, %s836_s22), 31 }
   0xf   : > { %s837_s4 = sshll.u32 %s1256_s22, 3 }
  0x10   : > { %s221_s25 = scalar_lea.vmem %s1249_s0, %s837_s4  ;;  %s1212_s10 = scalar_lea.vmem %s1254_s5, %s837_s4 }
  0x11   : > { %v925_v1 = vld [vmem:[%s221_s25 + $0x10] sm:$0xff]  ;;  %v927_v2 = vld [vmem:[%s221_s25] sm:$0xff]  ;;  %v931_v3 = vld [vmem:[%s221_s25 + $0x18] sm:$0xff] }
  0x12   : > { %258 = vperm.xlu1 %857, %v925_v1   ;;  %248 = vperm.xlu0 %856, %v927_v2   ;;  %v933_v4 = vld [vmem:[%s221_s25 + $0x8] sm:$0xff]  ;;  %v939_v6 = vld [vmem:[%s221_s25 + $0x20] sm:$0xff]  ;;  %v943_v7 = vld [vmem:[%s221_s25 + $0x38] sm:$0xff] }
  0x13   : > { %v937_v5 = vld [vmem:[%s221_s25 + $0x28] sm:$0xff]  ;;  %v945_v8 = vld [vmem:[%s221_s25 + $0x30] sm:$0xff]  ;;  %v951_v10 = vld [vmem:[%s221_s25 + $0x40] sm:$0xff] }
  0x14   : > { %v949_v9 = vld [vmem:[%s221_s25 + $0x48] sm:$0xff]  ;;  %v240_v11 = vld [vmem:[%s221_s25 + $0x58] sm:$0xff]  ;;  %v955_v12 = vld [vmem:[%s221_s25 + $0x50] sm:$0xff] }
  0x15   : > { %v242_v13 = vld [vmem:[%s221_s25 + $0x68] sm:$0xff]  ;;  %v241_v14 = vld [vmem:[%s221_s25 + $0x60] sm:$0xff]  ;;  %v244_v15 = vld [vmem:[%s221_s25 + $0x78] sm:$0xff] }
  0x16   : > { %263 = vperm.xlu1 %857, %v931_v3   ;;  %253 = vperm.xlu0 %856, %v933_v4   ;;  %v243_v16 = vld [vmem:[%s221_s25 + $0x70] sm:$0xff] }
  0x1a   : > { %273 = vperm.xlu1 %857, %v937_v5   ;;  %268 = vperm.xlu0 %856, %v939_v6  }
  0x1e   : > { %283 = vperm.xlu1 %857, %v943_v7   ;;  %278 = vperm.xlu0 %856, %v945_v8  }
  0x22   : > { %293 = vperm.xlu1 %857, %v949_v9   ;;  %288 = vperm.xlu0 %856, %v951_v10  }
  0x26   : > { %303 = vperm.xlu1 %857, %v240_v11   ;;  %298 = vperm.xlu0 %856, %v955_v12  }
  0x2a   : > { %313 = vperm.xlu1 %857, %v242_v13   ;;  %308 = vperm.xlu0 %856, %v241_v14  }
  0x2e   : > { %323 = vperm.xlu1 %857, %v244_v15   ;;  %318 = vperm.xlu0 %856, %v243_v16  }
  0x32   : > { %859 = vset.pattern.permute.xlu1 %v873_v17  ;;  %858 = vset.pattern.permute.xlu0 %v873_v17 }
  0x33   : > { %351 = vperm.xlu1 %859, %v933_v4   ;;  %347 = vperm.xlu0 %858, %v927_v2  }
  0x37   : > { %355 = vperm.xlu1 %859, %v925_v1   ;;  %359 = vperm.xlu0 %858, %v931_v3  }
  0x3b   : > { %363 = vperm.xlu1 %859, %v939_v6   ;;  %367 = vperm.xlu0 %858, %v937_v5  }
  0x3f   : > { %371 = vperm.xlu1 %859, %v945_v8   ;;  %375 = vperm.xlu0 %858, %v943_v7  }
  0x43   : > { %379 = vperm.xlu1 %859, %v951_v10   ;;  %383 = vperm.xlu0 %858, %v949_v9  }
  0x47   : > { %387 = vperm.xlu1 %859, %v955_v12   ;;  %391 = vperm.xlu0 %858, %v240_v11  }
  0x4b   : > { %395 = vperm.xlu1 %859, %v241_v14   ;;  %399 = vperm.xlu0 %858, %v242_v13  }
  0x4f   : > { %403 = vperm.xlu1 %859, %v243_v16   ;;  %407 = vperm.xlu0 %858, %v244_v15  }
  0x53   : > { %860 = vset.pattern.permute.xlu1 %v874_v18  ;;  %861 = vset.pattern.permute.xlu0 %v874_v18 }
  0x54   : > { %447 = vperm.xlu1 %860, %v927_v2   ;;  %451 = vperm.xlu0 %861, %v933_v4  }
  0x58   : > { %455 = vperm.xlu1 %860, %v925_v1   ;;  %463 = vperm.xlu0 %861, %v939_v6  }
  0x5c   : > { %459 = vperm.xlu1 %860, %v931_v3   ;;  %471 = vperm.xlu0 %861, %v945_v8  }
  0x60   : > { %467 = vperm.xlu1 %860, %v937_v5   ;;  %479 = vperm.xlu0 %861, %v951_v10  }
  0x64   : > { %475 = vperm.xlu1 %860, %v943_v7   ;;  %487 = vperm.xlu0 %861, %v955_v12  }
  0x68   : > { %483 = vperm.xlu1 %860, %v949_v9   ;;  %495 = vperm.xlu0 %861, %v241_v14  }
  0x6c   : > { %491 = vperm.xlu1 %860, %v240_v11   ;;  %503 = vperm.xlu0 %861, %v243_v16  }
  0x70   : > { %499 = vperm.xlu1 %860, %v242_v13   ;;  %862 = vset.pattern.permute.xlu0 %v875_v19 }
  0x71   : > { %547 = vperm.xlu0 %862, %v927_v2  }
  0x74   : > { %507 = vperm.xlu1 %860, %v244_v15  }
  0x75   : > { %559 = vperm.xlu0 %862, %v931_v3  }
  0x78   : > { %863 = vset.pattern.permute.xlu1 %v875_v19 }
  0x79   : > { %551 = vperm.xlu1 %863, %v933_v4   ;;  %567 = vperm.xlu0 %862, %v937_v5  }
  0x7d   : > { %555 = vperm.xlu1 %863, %v925_v1   ;;  %575 = vperm.xlu0 %862, %v943_v7  }
  0x81   : > { %563 = vperm.xlu1 %863, %v939_v6   ;;  %583 = vperm.xlu0 %862, %v949_v9  }
  0x85   : > { %571 = vperm.xlu1 %863, %v945_v8   ;;  %591 = vperm.xlu0 %862, %v240_v11  }
  0x89   : > { %579 = vperm.xlu1 %863, %v951_v10   ;;  %599 = vperm.xlu0 %862, %v242_v13  }
  0x8d   : > { %587 = vperm.xlu1 %863, %v955_v12   ;;  %607 = vperm.xlu0 %862, %v244_v15  }
  0x91   : > { %v259_v20 = vpop.permute.xlu1 %258  ;;  %595 = vperm.xlu1 %863, %v241_v14   ;;  %v991_v21 = vpop.permute.xlu0 %248 }
  0x92   : > { %v332_v50 = vmul.f32 %v1020_v42, %v259_v20 }
  0x95   : > { %v993_v22 = vpop.permute.xlu1 %263  ;;  %603 = vperm.xlu1 %863, %v243_v16   ;;  %v254_v23 = vpop.permute.xlu0 %253 }
  0x96   : > { %v331_v45 = vmul.f32 %v1020_v42, %v254_v23 }
  0x99   : > { %v995_v24 = vpop.permute.xlu1 %273  ;;  %v269_v25 = vpop.permute.xlu0 %268 }
  0x9a   : > { %v334_v55 = vmul.f32 %v1020_v42, %v269_v25 }
  0x9d   : > { %v997_v26 = vpop.permute.xlu1 %283  ;;  %v279_v27 = vpop.permute.xlu0 %278 }
  0x9e   : > { %v336_v60 = vmul.f32 %v1020_v42, %v279_v27 }
  0xa1   : > { %v999_v28 = vpop.permute.xlu1 %293  ;;  %v289_v29 = vpop.permute.xlu0 %288 }
  0xa2   : > { %v338_v1 = vmul.f32 %v1020_v42, %v289_v29 }
  0xa5   : > { %v1001_v31 = vpop.permute.xlu1 %303  ;;  %v299_v32 = vpop.permute.xlu0 %298 }
  0xa6   : > { %v340_v6 = vmul.f32 %v1020_v42, %v299_v32 }
  0xa9   : > { %v1005_v34 = vpop.permute.xlu1 %313  ;;  %v309_v35 = vpop.permute.xlu0 %308 }
  0xaa   : > { %v342_v11 = vmul.f32 %v1020_v42, %v309_v35 }
  0xad   : > { %v1009_v38 = vpop.permute.xlu1 %323  ;;  %v319_v39 = vpop.permute.xlu0 %318 }
  0xae   : > { %v344_v16 = vmul.f32 %v1020_v42, %v319_v39 }
  0xb2   : > { %v352_v43 = vpop.permute.xlu1 %351  ;;  %v348_v44 = vpop.permute.xlu0 %347 }
  0xb3   : > { %v415_v46 = vmul.f32 %v1017_v41, %v352_v43 }
  0xb5   : > { %v1024_v47 = vadd.f32 %v415_v46, %v331_v45  ;;  %v1074_v45 = vrot.slane %v1014_v40, %v512_v37  ;;  %v612_v46 = vsub.s32 3, %v1003_v33 }
  0xb6   : > { %v356_v48 = vpop.permute.xlu1 %355  ;;  %v360_v49 = vpop.permute.xlu0 %359 }
  0xb7   : > { %v416_v51 = vmul.f32 %v1017_v41, %v356_v48  ;;  %v414_v48 = vmul.f32 %v1017_v41, %v348_v44  ;;  %v333_v44 = vmul.f32 %v1020_v42, %v993_v22 }
  0xb9   : > { %v1028_v52 = vadd.f32 %v416_v51, %v332_v50 }
  0xba   : > { %v364_v53 = vpop.permute.xlu1 %363  ;;  %v368_v54 = vpop.permute.xlu0 %367 }
  0xbb   : > { %v418_v56 = vmul.f32 %v1017_v41, %v364_v53  ;;  %v330_v53 = vmul.f32 %v1020_v42, %v991_v21  ;;  %v419_v21 = vmul.f32 %v1017_v41, %v368_v54 }
  0xbd   : > { %v1032_v57 = vadd.f32 %v418_v56, %v334_v55  ;;  %v1086_v56 = vrot.slane %v1014_v40, %v612_v46  ;;  %v1099_v40 = vld [vmem:[%s1251_s2] ss:$0 sm:$0xff] }
  0xbe   : > { %v372_v58 = vpop.permute.xlu1 %371  ;;  %v1034_v59 = vpop.permute.xlu0 %375 }
  0xbf   : > { %v420_v61 = vmul.f32 %v1017_v41, %v372_v58  ;;  %v430_v58 = vadd.f32 %v414_v48, %v330_v53 }
  0xc1   : > { %v1038_v62 = vadd.f32 %v420_v61, %v336_v60  ;;  %v417_v60 = vmul.f32 %v1017_v41, %v360_v49 }
  0xc2   : > { %v380_v63 = vpop.permute.xlu1 %379  ;;  %v1040_v0 = vpop.permute.xlu0 %383 }
  0xc3   : > { %v422_v2 = vmul.f32 %v1017_v41, %v380_v63 }
  0xc5   : > { %v1044_v3 = vadd.f32 %v422_v2, %v338_v1 }
  0xc6   : > { %v388_v4 = vpop.permute.xlu1 %387  ;;  %v1046_v5 = vpop.permute.xlu0 %391 }
  0xc7   : > { %v424_v7 = vmul.f32 %v1017_v41, %v388_v4  ;;  %v433_v4 = vadd.f32 %v417_v60, %v333_v44 }
  0xc9   : > { %v1050_v8 = vadd.f32 %v424_v7, %v340_v6  ;;  %v335_v7 = vmul.f32 %v1020_v42, %v995_v24  ;;  %v337_v24 = vmul.f32 %v1020_v42, %v997_v26  ;;  %v339_v26 = vmul.f32 %v1020_v42, %v999_v28 }
  0xca   : > { %v396_v9 = vpop.permute.xlu1 %395  ;;  %v1052_v10 = vpop.permute.xlu0 %399 }
  0xcb   : > { %v426_v12 = vmul.f32 %v1017_v41, %v396_v9 }
  0xcd   : > { %v1056_v13 = vadd.f32 %v426_v12, %v342_v11 }
  0xce   : > { %v404_v14 = vpop.permute.xlu1 %403  ;;  %v1058_v15 = vpop.permute.xlu0 %407 }
  0xcf   : > { %v428_v17 = vmul.f32 %v1017_v41, %v404_v14 }
  0xd1   : > { %v1062_v18 = vadd.f32 %v428_v17, %v344_v16  ;;  %v435_v16 = vadd.f32 %v419_v21, %v335_v7  ;;  %v421_v17 = vmul.f32 %v1017_v41, %v1034_v59  ;;  %v343_v21 = vmul.f32 %v1020_v42, %v1005_v34 }
  0xd2   : > { %v425_v34 = vmul.f32 %v1017_v41, %v1046_v5 }
  0xd3   : > { %v448_v19 = vpop.permute.xlu1 %447  ;;  %v452_v20 = vpop.permute.xlu0 %451 }
  0xd4   : > { %v514_v55 = vmul.f32 %v1074_v45, %v448_v19  ;;  %v515_v22 = vmul.f32 %v1074_v45, %v452_v20  ;;  %v1114_v19 = vld [vmem:[%s1252_s3] ss:$0 sm:$0xff] }
  0xd6   : > { %v530_v63 = vadd.f32 %v514_v55, %v430_v58 }
  0xd7   : > { %v456_v23 = vpop.permute.xlu1 %455  ;;  %v464_v25 = vpop.permute.xlu0 %463 }
  0xd8   : > { %v516_v37 = vmul.f32 %v1074_v45, %v456_v23  ;;  %v437_v23 = vadd.f32 %v421_v17, %v337_v24  ;;  %v518_v44 = vmul.f32 %v1074_v45, %v464_v25 }
  0xdb   : > { %v460_v27 = vpop.permute.xlu1 %459  ;;  %v1064_v29 = vpop.permute.xlu0 %471 }
  0xdc   : > { %v517_v1 = vmul.f32 %v1074_v45, %v460_v27  ;;  %v520_v17 = vmul.f32 %v1074_v45, %v1064_v29 }
  0xde   : > { %v533_v12 = vadd.f32 %v517_v1, %v433_v4  ;;  %v532_v4 = vadd.f32 %v516_v37, %v1028_v52 }
  0xdf   : > { %v468_v30 = vpop.permute.xlu1 %467  ;;  %v1066_v32 = vpop.permute.xlu0 %479 }
  0xe0   : > { %v519_v9 = vmul.f32 %v1074_v45, %v468_v30  ;;  %v531_v30 = vadd.f32 %v515_v22, %v1024_v47  ;;  %v341_v47 = vmul.f32 %v1020_v42, %v1001_v31 }
  0xe2   : > { %v535_v46 = vadd.f32 %v519_v9, %v435_v16 }
  0xe3   : > { %v476_v35 = vpop.permute.xlu1 %475  ;;  %v1068_v36 = vpop.permute.xlu0 %487 }
  0xe4   : > { %v521_v48 = vmul.f32 %v1074_v45, %v476_v35  ;;  %v423_v35 = vmul.f32 %v1017_v41, %v1040_v0 }
  0xe7   : > { %v484_v39 = vpop.permute.xlu1 %483  ;;  %v1071_v43 = vpop.permute.xlu0 %495 }
  0xe8   : > { %v523_v28 = vmul.f32 %v1074_v45, %v484_v39  ;;  %v534_v39 = vadd.f32 %v518_v44, %v1032_v57 }
  0xeb   : > { %v1078_v50 = vpop.permute.xlu1 %491  ;;  %v1080_v51 = vpop.permute.xlu0 %503 }
  0xef   : > { %v1089_v61 = vpop.permute.xlu1 %499 }
  0xf0   : > { %v548_v33 = vpop.permute.xlu0 %547 }
  0xf1   : > { %v614_v2 = vmul.f32 %v1086_v56, %v548_v33 }
  0xf3   : > { %v630_v49 = vadd.f32 %v614_v2, %v530_v63  ;;  %v1101_v6 = vpop.permute.xlu1 %507 }
  0xf4   : > { %v560_v11 = vpop.permute.xlu0 %559 }
  0xf5   : > { %v617_v54 = vmul.f32 %v1086_v56, %v560_v11  ;;  %v653_v14 = vadd.f32 %v1099_v40, %v630_v49  ;;  %v537_v49 = vadd.f32 %v521_v48, %v437_v23  ;;  %v345_v11 = vmul.f32 %v1020_v42, %v1009_v38 }
  0xf6   : > { %v427_v48 = vmul.f32 %v1017_v41, %v1052_v10 }
  0xf7   : > { %v633_v20 = vadd.f32 %v617_v54, %v533_v12  ;;  %v669_v27 = vmax.f32 %v653_v14, 0.0  ;;  %v439_v12 = vadd.f32 %v423_v35, %v339_v26  ;;  %v527_v26 = vmul.f32 %v1074_v45, %v1089_v61 }
  0xf8   : > { %v552_v53 = vpop.permute.xlu1 %551  ;;  %v568_v55 = vpop.permute.xlu0 %567 }
  0xf9   : > { %v615_v59 = vmul.f32 %v1086_v56, %v552_v53  ;;  %v619_v58 = vmul.f32 %v1086_v56, %v568_v55  ;;  %v692_v60 = vmul.f32 %v1114_v19, %v669_v27  ;;  %v656_v33 = vadd.f32 %v1099_v40, %v633_v20 }
  0xfa   : > { %v539_v24 = vadd.f32 %v523_v28, %v439_v12  ;;  %v525_v20 = vmul.f32 %v1074_v45, %v1078_v50  ;;  %v522_v50 = vmul.f32 %v1074_v45, %v1066_v32 }
  0xfb   : > { %v631_v63 = vadd.f32 %v615_v59, %v531_v30  ;;  %v635_v1 = vadd.f32 %v619_v58, %v535_v46  ;;  %708 = vadd.xlane.f32.xlu1 %v692_v60  ;;  %v672_v2 = vmax.f32 %v656_v33, 0.0  ;;  %v441_v46 = vadd.f32 %v425_v34, %v341_v47 }
  0xfc   : > { %v556_v7 = vpop.permute.xlu1 %555  ;;  %v576_v31 = vpop.permute.xlu0 %575  ;;  %v536_v60 = vadd.f32 %v520_v17, %v1038_v62  ;;  %v429_v62 = vmul.f32 %v1017_v41, %v1058_v15 }
  0xfd   : > { %v616_v22 = vmul.f32 %v1086_v56, %v556_v7  ;;  %v621_v0 = vmul.f32 %v1086_v56, %v576_v31  ;;  %v695_v25 = vmul.f32 %v1114_v19, %v672_v2  ;;  %v654_v9 = vadd.f32 %v1099_v40, %v631_v63 }
  0xfe   : > { %v658_v52 = vadd.f32 %v1099_v40, %v635_v1  ;;  %v541_v33 = vadd.f32 %v525_v20, %v441_v46  ;;  %v443_v1 = vadd.f32 %v427_v48, %v343_v21  ;;  %v524_v31 = vmul.f32 %v1074_v45, %v1068_v36 }
  0xff   : > { %v632_v54 = vadd.f32 %v616_v22, %v532_v4  ;;  %v637_v14 = vadd.f32 %v621_v0, %v537_v49  ;;  %714 = vadd.xlane.f32.xlu1 %v695_v25  ;;  %v670_v16 = vmax.f32 %v654_v9, 0.0  ;;  %v538_v4 = vadd.f32 %v522_v50, %v1044_v3 }
 0x100   : > { %v564_v38 = vpop.permute.xlu1 %563  ;;  %v584_v42 = vpop.permute.xlu0 %583  ;;  %v674_v27 = vmax.f32 %v658_v52, 0.0  ;;  %v543_v22 = vadd.f32 %v527_v26, %v443_v1  ;;  %v529_v21 = vmul.f32 %v1074_v45, %v1101_v6  ;;  %v445_v34 = vadd.f32 %v429_v62, %v345_v11 }
 0x101   : > { %v618_v5 = vmul.f32 %v1086_v56, %v564_v38  ;;  %v623_v30 = vmul.f32 %v1086_v56, %v584_v42  ;;  %v693_v57 = vmul.f32 %v1114_v19, %v670_v16  ;;  %v655_v37 = vadd.f32 %v1099_v40, %v632_v54 }
 0x102   : > { %v697_v29 = vmul.f32 %v1114_v19, %v674_v27  ;;  %v660_v53 = vadd.f32 %v1099_v40, %v637_v14  ;;  %v540_v14 = vadd.f32 %v524_v31, %v1050_v8  ;;  %v526_v16 = vmul.f32 %v1074_v45, %v1071_v43 }
 0x103   : > { %v634_v55 = vadd.f32 %v618_v5, %v534_v39  ;;  %v639_v59 = vadd.f32 %v623_v30, %v539_v24  ;;  %710 = vadd.xlane.f32.xlu0 %v693_v57  ;;  %v671_v58 = vmax.f32 %v655_v37, 0.0  ;;  %v545_v17 = vadd.f32 %v529_v21, %v445_v34 }
 0x104   : > { %718 = vadd.xlane.f32.xlu1 %v697_v29  ;;  %v572_v47 = vpop.permute.xlu1 %571  ;;  %v592_v10 = vpop.permute.xlu0 %591  ;;  %v676_v23 = vmax.f32 %v660_v53, 0.0  ;;  %v542_v46 = vadd.f32 %v526_v16, %v1056_v13  ;;  %v528_v48 = vmul.f32 %v1074_v45, %v1080_v51 }
 0x105   : > { %v620_v35 = vmul.f32 %v1086_v56, %v572_v47  ;;  %v625_v44 = vmul.f32 %v1086_v56, %v592_v10  ;;  %v694_v32 = vmul.f32 %v1114_v19, %v671_v58  ;;  %v657_v63 = vadd.f32 %v1099_v40, %v634_v55 }
 0x106   : > { %v699_v2 = vmul.f32 %v1114_v19, %v676_v23  ;;  %v662_v61 = vadd.f32 %v1099_v40, %v639_v59  ;;  %v544_v47 = vadd.f32 %v528_v48, %v1062_v18 }
 0x107   : > { %v636_v49 = vadd.f32 %v620_v35, %v536_v60  ;;  %v641_v28 = vadd.f32 %v625_v44, %v541_v33  ;;  %712 = vadd.xlane.f32.xlu0 %v694_v32  ;;  %v673_v7 = vmax.f32 %v657_v63, 0.0 }
 0x108   : > { %722 = vadd.xlane.f32.xlu1 %v699_v2  ;;  %v580_v0 = vpop.permute.xlu1 %579  ;;  %v600_v41 = vpop.permute.xlu0 %599  ;;  %v678_v15 = vmax.f32 %v662_v61, 0.0 }
 0x109   : > { %v622_v25 = vmul.f32 %v1086_v56, %v580_v0  ;;  %v627_v9 = vmul.f32 %v1086_v56, %v600_v41  ;;  %v696_v3 = vmul.f32 %v1114_v19, %v673_v7  ;;  %v659_v12 = vadd.f32 %v1099_v40, %v636_v49 }
 0x10a   : > { %v701_v52 = vmul.f32 %v1114_v19, %v678_v15  ;;  %v664_v36 = vadd.f32 %v1099_v40, %v641_v28 }
 0x10b   : > { %v638_v39 = vadd.f32 %v622_v25, %v538_v4  ;;  %v643_v54 = vadd.f32 %v627_v9, %v543_v22  ;;  %716 = vadd.xlane.f32.xlu0 %v696_v3  ;;  %v675_v6 = vmax.f32 %v659_v12, 0.0 }
 0x10c   : > { %726 = vadd.xlane.f32.xlu1 %v701_v52  ;;  %v588_v24 = vpop.permute.xlu1 %587  ;;  %v608_v20 = vpop.permute.xlu0 %607  ;;  %v680_v38 = vmax.f32 %v664_v36, 0.0 }
 0x10d   : > { %v624_v11 = vmul.f32 %v1086_v56, %v588_v24  ;;  %v629_v42 = vmul.f32 %v1086_v56, %v608_v20  ;;  %v698_v27 = vmul.f32 %v1114_v19, %v675_v6  ;;  %v661_v5 = vadd.f32 %v1099_v40, %v638_v39 }
 0x10e   : > { %v703_v30 = vmul.f32 %v1114_v19, %v680_v38  ;;  %v666_v8 = vadd.f32 %v1099_v40, %v643_v54 }
 0x10f   : > { %v640_v57 = vadd.f32 %v624_v11, %v540_v14  ;;  %v645_v37 = vadd.f32 %v629_v42, %v545_v17  ;;  %720 = vadd.xlane.f32.xlu0 %v698_v27  ;;  %v677_v43 = vmax.f32 %v661_v5, 0.0 }
 0x110   : > { %730 = vadd.xlane.f32.xlu1 %v703_v30  ;;  %v596_v29 = vpop.permute.xlu1 %595  ;;  %v682_v53 = vmax.f32 %v666_v8, 0.0 }
 0x111   : > { %v626_v50 = vmul.f32 %v1086_v56, %v596_v29  ;;  %v700_v55 = vmul.f32 %v1114_v19, %v677_v43  ;;  %v663_v59 = vadd.f32 %v1099_v40, %v640_v57  ;;  %v668_v58 = vadd.f32 %v1099_v40, %v645_v37 }
 0x112   : > { %v705_v60 = vmul.f32 %v1114_v19, %v682_v53 }
 0x113   : > { %v642_v33 = vadd.f32 %v626_v50, %v542_v46  ;;  %724 = vadd.xlane.f32.xlu0 %v700_v55  ;;  %v679_v26 = vmax.f32 %v663_v59, 0.0  ;;  %v684_v13 = vmax.f32 %v668_v58, 0.0 }
 0x114   : > { %734 = vadd.xlane.f32.xlu1 %v705_v60  ;;  %v604_v45 = vpop.permute.xlu1 %603 }
 0x115   : > { %v628_v51 = vmul.f32 %v1086_v56, %v604_v45  ;;  %v702_v10 = vmul.f32 %v1114_v19, %v679_v26  ;;  %v707_v23 = vmul.f32 %v1114_v19, %v684_v13  ;;  %v665_v35 = vadd.f32 %v1099_v40, %v642_v33 }
 0x116   : > { %v741_v56 = vstv %s740_s7 }
 0x117   : > { %v644_v44 = vadd.f32 %v628_v51, %v544_v47  ;;  %728 = vadd.xlane.f32.xlu0 %v702_v10  ;;  %v681_v32 = vmax.f32 %v665_v35, 0.0 }
 0x118   : > { %738 = vadd.xlane.f32.xlu1 %v707_v23 }
 0x119   : > { %v704_v63 = vmul.f32 %v1114_v19, %v681_v32  ;;  %v667_v1 = vadd.f32 %v1099_v40, %v644_v44 }
 0x11b   : > { %732 = vadd.xlane.f32.xlu0 %v704_v63  ;;  %v683_v18 = vmax.f32 %v667_v1, 0.0 }
 0x11d   : > { %v706_v62 = vmul.f32 %v1114_v19, %v683_v18 }
 0x11f   : > { %736 = vadd.xlane.f32.xlu0 %v706_v62 }
 0x188   : > { %v709_v2 = vpop.xlane.xlu1 %708 }
 0x189   : > { %v742_v40 = vadd.f32 %v741_v56, %v709_v2 }
 0x18b   : > { %759 = vst.msk [vmem:[%s1212_s10] sm:$0xff] %vm758_vm0, %v742_v40 }
 0x18c   : > { %v715_v19 = vpop.xlane.xlu1 %714 }
 0x18d   : > { %v745_v61 = vadd.f32 %v741_v56, %v715_v19 }
 0x18f   : > { %762 = vst.msk [vmem:[%s1212_s10 + $0x18] sm:$0xff] %vm758_vm0, %v745_v61 }
 0x190   : > { %v711_v4 = vpop.xlane.xlu0 %710 }
 0x191   : > { %v719_v49 = vpop.xlane.xlu1 %718  ;;  %v743_v28 = vadd.f32 %v741_v56, %v711_v4 }
 0x192   : > { %v747_v7 = vadd.f32 %v741_v56, %v719_v49 }
 0x193   : > { %760 = vst.msk [vmem:[%s1212_s10 + $0x8] sm:$0xff] %vm758_vm0, %v743_v28 }
 0x194   : > { %764 = vst.msk [vmem:[%s1212_s10 + $0x28] sm:$0xff] %vm758_vm0, %v747_v7  ;;  %v713_v31 = vpop.xlane.xlu0 %712 }
 0x195   : > { %v723_v22 = vpop.xlane.xlu1 %722  ;;  %v744_v21 = vadd.f32 %v741_v56, %v713_v31 }
 0x196   : > { %v749_v0 = vadd.f32 %v741_v56, %v723_v22 }
 0x197   : > { %761 = vst.msk [vmem:[%s1212_s10 + $0x10] sm:$0xff] %vm758_vm0, %v744_v21 }
 0x198   : > { %766 = vst.msk [vmem:[%s1212_s10 + $0x38] sm:$0xff] %vm758_vm0, %v749_v0  ;;  %v717_v41 = vpop.xlane.xlu0 %716 }
 0x199   : > { %v727_v15 = vpop.xlane.xlu1 %726  ;;  %v746_v25 = vadd.f32 %v741_v56, %v717_v41 }
 0x19a   : > { %v751_v9 = vadd.f32 %v741_v56, %v727_v15 }
 0x19b   : > { %763 = vst.msk [vmem:[%s1212_s10 + $0x20] sm:$0xff] %vm758_vm0, %v746_v25 }
 0x19c   : > { %768 = vst.msk [vmem:[%s1212_s10 + $0x48] sm:$0xff] %vm758_vm0, %v751_v9  ;;  %v721_v3 = vpop.xlane.xlu0 %720 }
 0x19d   : > { %v731_v12 = vpop.xlane.xlu1 %730  ;;  %v748_v34 = vadd.f32 %v741_v56, %v721_v3 }
 0x19e   : > { %v753_v52 = vadd.f32 %v741_v56, %v731_v12 }
 0x19f   : > { %765 = vst.msk [vmem:[%s1212_s10 + $0x30] sm:$0xff] %vm758_vm0, %v748_v34 }
 0x1a0   : > { %770 = vst.msk [vmem:[%s1212_s10 + $0x58] sm:$0xff] %vm758_vm0, %v753_v52  ;;  %v725_v36 = vpop.xlane.xlu0 %724 }
 0x1a1   : > { %v735_v39 = vpop.xlane.xlu1 %734  ;;  %v750_v54 = vadd.f32 %v741_v56, %v725_v36 }
 0x1a2   : > { %v755_v6 = vadd.f32 %v741_v56, %v735_v39 }
 0x1a3   : > { %767 = vst.msk [vmem:[%s1212_s10 + $0x40] sm:$0xff] %vm758_vm0, %v750_v54 }
 0x1a4   : > { %772 = vst.msk [vmem:[%s1212_s10 + $0x68] sm:$0xff] %vm758_vm0, %v755_v6  ;;  %v729_v14 = vpop.xlane.xlu0 %728 }
 0x1a5   : > { %v739_v16 = vpop.xlane.xlu1 %738  ;;  %v752_v17 = vadd.f32 %v741_v56, %v729_v14 }
 0x1a6   : > { %v757_v24 = vadd.f32 %v741_v56, %v739_v16 }
 0x1a7   : > { %769 = vst.msk [vmem:[%s1212_s10 + $0x50] sm:$0xff] %vm758_vm0, %v752_v17 }
 0x1a8   : > { %774 = vst.msk [vmem:[%s1212_s10 + $0x78] sm:$0xff] %vm758_vm0, %v757_v24  ;;  %v733_v20 = vpop.xlane.xlu0 %732 }
 0x1a9   : > { %v754_v38 = vadd.f32 %v741_v56, %v733_v20 }
 0x1ab   : > { %771 = vst.msk [vmem:[%s1212_s10 + $0x60] sm:$0xff] %vm758_vm0, %v754_v38 }
 0x1ac   : > { %v737_v11 = vpop.xlane.xlu0 %736 }
 0x1ad   : > { %v756_v42 = vadd.f32 %v741_v56, %v737_v11 }
 0x1af   : > { %773 = vst.msk [vmem:[%s1212_s10 + $0x70] sm:$0xff] %vm758_vm0, %v756_v42 }
 0x1b0 PF: > { %s16_s20 = sadd.s32 1, %s870_s20  }
 0x1b1   : > { %p13_p4 = scmp.ge.s32.totalorder %s16_s20, 4  }
 0x1b3   :  { %15 = sbr.rel (!%p13_p4) target bundleno = 2 (0x2), region = 70 }

</bundles_post_ra>
